<compile_context>
chip_gen: v7x
topology: tpu7x:2x2x1
jax: 0.10.0
libtpu: 0.0.40
codegen_flags: <defaults>
</compile_context>

<pallas_src>
import jax
import jax.numpy as jnp
from jax.experimental import pallas as pl
from jax.experimental.pallas import tpu as pltpu


_LANES = 128


def _mish_kernel(x_ref, o_ref):
    """mish(x) = x * tanh(softplus(x)).

    tanh(log1p(e^x)) == (t*(t+2)) / (t*(t+2) + 2) with t = e^x, which needs
    only exp + reciprocal on the EUP (vs exp + log1p + tanh).
    """
    x = x_ref[...].astype(jnp.float32)
    t = jnp.exp(x)                              # EUP
    num = t * (t + 2.0)                         # VPU
    den = num + 2.0                             # VPU
    inv = pl.reciprocal(den, approx=True)       # EUP (approx)
    inv = inv * (2.0 - den * inv)               # one Newton step (VPU, free)
    y = x * num * inv
    # For x > 20 tanh(softplus(x)) == 1 to f32 precision (matches PyTorch's
    # softplus threshold); this also discards the inf/inf -> nan path that
    # appears when exp(2x) overflows (x > ~44).
    y = jnp.where(x > 20.0, x, y)
    o_ref[...] = y.astype(o_ref.dtype)


def _sublane_for(dtype) -> int:
    itemsize = jnp.dtype(dtype).itemsize
    return {4: 8, 2: 16, 1: 32}.get(itemsize, 8)


def mish(x: jnp.ndarray, *, block_rows: int = 2048) -> jnp.ndarray:
    """Element-wise mish. Any shape / float dtype; output matches input."""
    orig_shape = x.shape
    dtype = x.dtype
    n = x.size
    if n == 0:
        return x

    sublane = _sublane_for(dtype)
    tile_elems = sublane * _LANES

    flat = x.reshape(-1)
    if n % tile_elems == 0:
        # Common case: no padding, no trailing slice -- reshapes only.
        rows = n // _LANES
        x2d = flat.reshape(rows, _LANES)
        pad = 0
    else:
        # Pad only up to the next (sublane x 128) tile, not up to block_rows.
        rows = pl.cdiv(n, tile_elems) * sublane
        pad = rows * _LANES - n
        x2d = jnp.concatenate(
            [flat, jnp.zeros((pad,), dtype=dtype)]
        ).reshape(rows, _LANES)

    # Block rows: large (amortize ~0.35us/grid-step), a multiple of the dtype
    # sublane tile, clamped to the slab size. 2048 rows = 1 MiB f32 per block,
    # so double-buffered in+out stays at ~4 MiB of VMEM (safe on v7x's 64 MiB).
    br = max(sublane, (int(block_rows) // sublane) * sublane)
    br = min(br, rows)
    # Give the v7x megacore >= 8 grid steps to shard across TensorCores when
    # the tensor is large enough that each step still carries >= 256 KiB (f32).
    if pl.cdiv(rows, br) < 8 and rows >= 8 * 512:
        br = pl.cdiv(pl.cdiv(rows, 8), sublane) * sublane
    grid = (pl.cdiv(rows, br),)

    n_eff = rows * _LANES
    itemsize = jnp.dtype(dtype).itemsize

    out2d = pl.pallas_call(
        _mish_kernel,
        out_shape=jax.ShapeDtypeStruct((rows, _LANES), dtype),
        grid_spec=pltpu.PrefetchScalarGridSpec(
            num_scalar_prefetch=0,
            grid=grid,
            in_specs=[pl.BlockSpec((br, _LANES), lambda i: (i, 0))],
            out_specs=pl.BlockSpec((br, _LANES), lambda i: (i, 0)),
        ),
        compiler_params=pltpu.CompilerParams(
            dimension_semantics=("parallel",),
        ),
        cost_estimate=pl.CostEstimate(
            flops=8 * n_eff,
            transcendentals=2 * n_eff,
            bytes_accessed=2 * n_eff * itemsize,
        ),
    )(x2d)

    if pad:
        return out2d.reshape(-1)[:n].reshape(orig_shape)
    return out2d.reshape(orig_shape)


def _mish_ref(x):
    """Pure-JAX reference: x * tanh(softplus(x)) with stable softplus."""
    xf = x.astype(jnp.float32)
    sp = jnp.maximum(xf, 0.0) + jnp.log1p(jnp.exp(-jnp.abs(xf)))
    return (xf * jnp.tanh(sp)).astype(x.dtype)


if __name__ == "__main__":
    # Shapes consistent with the module (element-wise on an NCHW activation).
    key = jax.random.PRNGKey(0)
    x = jax.random.normal(key, (2, 4, 16, 16), dtype=jnp.float32) * 3.0

    y = mish(x)
    jax.block_until_ready(y)
    y_ref = _mish_ref(x)
    assert y.shape == x.shape and y.dtype == x.dtype
    assert jnp.allclose(y, y_ref, atol=1e-5, rtol=1e-5)

    # Non-tile-divisible (padded) path + extreme values (overflow guard).
    x2 = jnp.concatenate([
        jax.random.normal(jax.random.PRNGKey(1), (105,), dtype=jnp.float32) * 10.0,
        jnp.array([-100.0, -20.0, 0.0, 25.0, 60.0], dtype=jnp.float32),
    ])
    y2 = mish(x2)
    jax.block_until_ready(y2)
    assert y2.shape == x2.shape and y2.dtype == x2.dtype
    assert bool(jnp.all(jnp.isfinite(y2)))
    assert jnp.allclose(y2, _mish_ref(x2), atol=1e-5, rtol=1e-5)

    # bf16 path (16-sublane tile).
    xb = (jax.random.normal(jax.random.PRNGKey(2), (2, 4, 16, 16),
                            dtype=jnp.bfloat16) * 3)
    yb = mish(xb)
    jax.block_until_ready(yb)
    assert yb.shape == xb.shape and yb.dtype == xb.dtype
    assert jnp.allclose(yb.astype(jnp.float32),
                        _mish_ref(xb).astype(jnp.float32),
                        atol=5e-2, rtol=2e-2)

    print("KERNEL_OK")
</pallas_src>

<mosaic_0001>
module attributes {stable_mosaic.version = 11 : i64} {
  func.func @_mish_kernel(%arg0: i32, %arg1: memref<16x128xf32, #tpu.memory_space<vmem>>, %arg2: memref<16x128xf32, #tpu.memory_space<vmem>>) attributes {dimension_semantics = [#tpu.dimension_semantics<parallel>], iteration_bounds = array<i64: 1>, scalar_prefetch = 0 : i64, scratch_operands = 0 : i64, tpu.core_type = #tpu.core_type<tc>, window_params = [{transform_indices = @transform_0, window_bounds = array<i64: 16, 128>}, {transform_indices = @transform_1, window_bounds = array<i64: 16, 128>}]} {
    %c0 = arith.constant 0 : index
    %c0_0 = arith.constant 0 : index
    %0 = vector.load %arg1[%c0, %c0_0] : memref<16x128xf32, #tpu.memory_space<vmem>>, vector<16x128xf32>
    %1 = math.exp %0 : vector<16x128xf32>
    %cst = arith.constant 2.000000e+00 : f32
    %2 = vector.broadcast %cst : f32 to vector<16x128xf32>
    %3 = arith.addf %1, %2 : vector<16x128xf32>
    %4 = arith.mulf %1, %3 : vector<16x128xf32>
    %cst_1 = arith.constant 2.000000e+00 : f32
    %5 = vector.broadcast %cst_1 : f32 to vector<16x128xf32>
    %6 = arith.addf %4, %5 : vector<16x128xf32>
    %7 = tpu.reciprocal %6 {approx = true} : vector<16x128xf32> -> vector<16x128xf32>
    %8 = arith.mulf %6, %7 : vector<16x128xf32>
    %cst_2 = arith.constant 2.000000e+00 : f32
    %9 = vector.broadcast %cst_2 : f32 to vector<16x128xf32>
    %10 = arith.subf %9, %8 : vector<16x128xf32>
    %11 = arith.mulf %7, %10 : vector<16x128xf32>
    %12 = arith.mulf %0, %4 : vector<16x128xf32>
    %13 = arith.mulf %12, %11 : vector<16x128xf32>
    %cst_3 = arith.constant 2.000000e+01 : f32
    %14 = vector.broadcast %cst_3 : f32 to vector<16x128xf32>
    %15 = arith.cmpf ogt, %0, %14 : vector<16x128xf32>
    %16 = arith.select %15, %0, %13 : vector<16x128xi1>, vector<16x128xf32>
    %c0_4 = arith.constant 0 : index
    %c0_5 = arith.constant 0 : index
    %17 = vector.load %arg2[%c0_4, %c0_5] : memref<16x128xf32, #tpu.memory_space<vmem>>, vector<16x128xf32>
    tpu.vector_store %arg2[%c0_4, %c0_5], %16 {strides = array<i32>} : memref<16x128xf32, #tpu.memory_space<vmem>>, vector<16x128xf32>,
    return
  }
  func.func @transform_0(%arg0: i32) -> (i32, i32) {
    %c0_i32 = arith.constant 0 : i32
    %c0_i32_0 = arith.constant 0 : i32
    return %arg0, %c0_i32 : i32, i32
  }
  func.func @transform_1(%arg0: i32) -> (i32, i32) {
    %c0_i32 = arith.constant 0 : i32
    %c0_i32_0 = arith.constant 0 : i32
    return %arg0, %c0_i32 : i32, i32
  }
}

</mosaic_0001>

<bundles_post_ra>
// kernel: tpu_custom_call.1
= control target key start
LH: loop header
LB: loop body
LE: loop exit
PB: predicated region body
PF: predicated region fallthrough
CT: control target
= control target key end

     0   :  { %6 = vsyncpa [#allocation3], 0  ;;  %s174_s0 = inlined_call_operand.hbm [shape: f32[16,128], index: 0, kind: input, shape index: {}]   ;;  %s175_s1 = inlined_call_operand.hbm [shape: f32[16,128], index: 1, kind: output, shape index: {}]  }
   0x1   :  { %7 = vsyncpa [#allocation4], 0  ;;  %s130_s6 = smov [#allocation2]   ;;  %s82_s10 = scalar_lea.hbm %s174_s0, 256 }
   0x2   :  { %s13_s7 = sshll.u32 %s130_s6, 4  ;;  %p83_p0 = scmp.ne.s32.totalorder %s174_s0, %s82_s10  ;;  %s14_s7 = int_to_ptr.vmem [resolvable:$true] %s13_s7 }
   0x3   :  { %p86_p1 = scmp.lt.u32.totalorder %s82_s10, %s174_s0 }
   0x5   :  { %p88_p2 = pnand %p86_p1, %p83_p0 }
   0x7   :  { %91 = shalt.err (!%p88_p2)
}
   0x8   :  { %s92_s15 = scalar_lea.vmem %s14_s7, 256  ;;  %p97_p4 = scmp.lt.s32.totalorder %s14_s7, %s14_s7 }
   0x9   :  { %p93_p3 = scmp.ne.s32.totalorder %s14_s7, %s92_s15  ;;  %p98_p5 = scmp.lt.s32.totalorder %s92_s15, %s92_s15 }
   0xb   :  { %p99_p6 = por %p98_p5, %p97_p4 }
   0xd   :  { %p100_p7 = pnand %p99_p6, %p93_p3 }
   0xf   :  { %103 = shalt.err (!%p100_p7)
}
  0x10   :  { %s131_s16 = smov 128   ;;  %s132_s17 = smov 8  }
  0x11   :  { %19 = dma.hbm_to_vmem [thread:$0]  %s174_s0, 256, %s14_s7, [#allocation3], %s131_s16, %s131_s16, %s132_s17  }
  0x12   :  { %126 = dma.done.wait [#allocation3], 256  }
  0x13   :  { %127 = vsyncadd [#allocation3], 4294967040  ;;  %v23_v0 = vld [vmem:[#allocation2] sm:$0xff]  ;;  %v24_v1 = vld [vmem:[#allocation2 + $0x8] sm:$0xff]  ;;  %s133_s0 = smov [#allocation5]  }
  0x14   :  { %v25_v2 = vmul.f32 1.442695, %v23_v0  ;;  %v27_v3 = vmul.f32 1.442695, %v24_v1  ;;  %vm47_vm0 = vcmp.gt.f32.partialorder %v23_v0, 20.0  ;;  %s58_s20 = sshll.u32 %s133_s0, 4  ;;  %s59_s20 = int_to_ptr.vmem [resolvable:$true] %s58_s20 }
  0x15   :  { %vm48_vm1 = vcmp.gt.f32.partialorder %v24_v1, 20.0  ;;  %s104_s21 = scalar_lea.vmem %s59_s20, 256  ;;  %p109_p9 = scmp.lt.s32.totalorder %s59_s20, %s59_s20 }
  0x16   :  { %74 = vpow2.f32 %v25_v2  ;;  %p105_p8 = scmp.ne.s32.totalorder %s59_s20, %s104_s21  ;;  %p110_p10 = scmp.lt.s32.totalorder %s104_s21, %s104_s21 }
  0x17   :  { %76 = vpow2.f32 %v27_v3 }
  0x18   :  { %p111_p11 = por %p110_p10, %p109_p9 }
  0x1a   :  { %p112_p12 = pnand %p111_p11, %p105_p8 }
  0x20   :  { %v75_v4 = vpop.eup %74 }
  0x21   :  { %v77_v5 = vpop.eup %76  ;;  %v29_v6 = vadd.f32 2.0, %v75_v4 }
  0x22   :  { %v30_v7 = vadd.f32 2.0, %v77_v5 }
  0x23   :  { %v31_v8 = vmul.f32 %v75_v4, %v29_v6 }
  0x24   :  { %v32_v9 = vmul.f32 %v77_v5, %v30_v7 }
  0x25   :  { %v33_v10 = vadd.f32 2.0, %v31_v8  ;;  %v43_v17 = vmul.f32 %v31_v8, %v23_v0 }
  0x26   :  { %v34_v11 = vadd.f32 2.0, %v32_v9  ;;  %v44_v19 = vmul.f32 %v32_v9, %v24_v1 }
  0x27   :  { %78 = vrcp.f32 %v33_v10 }
  0x28   :  { %80 = vrcp.f32 %v34_v11 }
  0x31   :  { %v79_v12 = vpop.eup %78 }
  0x32   :  { %v81_v13 = vpop.eup %80  ;;  %v37_v14 = vmul.f32 %v79_v12, %v33_v10 }
  0x33   :  { %v38_v15 = vmul.f32 %v81_v13, %v34_v11 }
  0x34   :  { %v39_v16 = vsub.f32 2.0, %v37_v14 }
  0x35   :  { %v40_v18 = vsub.f32 2.0, %v38_v15 }
  0x36   :  { %v41_v20 = vmul.f32 %v79_v12, %v39_v16 }
  0x37   :  { %v42_v21 = vmul.f32 %v81_v13, %v40_v18 }
  0x38   :  { %v45_v22 = vmul.f32 %v43_v17, %v41_v20 }
  0x39   :  { %v46_v23 = vmul.f32 %v44_v19, %v42_v21 }
  0x3a   :  { %v49_v24 = vsel %vm47_vm0, %v23_v0, %v45_v22 }
  0x3b   :  { %51 = vst [vmem:[#allocation5] sm:$0xff] %v49_v24  ;;  %v50_v25 = vsel %vm48_vm1, %v24_v1, %v46_v23 }
  0x3c   :  { %52 = vst [vmem:[#allocation5 + $0x8] sm:$0xff] %v50_v25 }
  0x3d   :  { %115 = shalt.err (!%p112_p12)
}
  0x3e   :  { %s116_s24 = scalar_lea.hbm %s175_s1, 256 }
  0x3f   :  { %p117_p13 = scmp.ne.s32.totalorder %s175_s1, %s116_s24  ;;  %p120_p0 = scmp.lt.u32.totalorder %s116_s24, %s175_s1 }
  0x41   :  { %p122_p1 = pnand %p120_p0, %p117_p13 }
  0x43   :  { %125 = shalt.err (!%p122_p1)
}
  0x44   :  { %64 = dma.vmem_to_hbm [thread:$0]  %s59_s20, 256, %s175_s1, [#allocation4], %s131_s16, %s131_s16, %s132_s17  }
  0x45   :  { %128 = dma.done.wait [#allocation4], 256  }
  0x46   :  { %129 = vsyncadd [#allocation4], 4294967040 }
  0x47   :  { %68 = vsyncpa [#allocation3], 1 }
  0x48   :  { %69 = vsyncpa [#allocation4], 1 }

</bundles_post_ra>
